<compile_context>
chip_gen: v7x
topology: tpu7x:2x2x1
jax: 0.10.0
libtpu: 0.0.40
codegen_flags: <defaults>
</compile_context>

<pallas_src>
import functools

import jax
import jax.numpy as jnp
from jax import lax
from jax.experimental import pallas as pl
from jax.experimental.pallas import tpu as pltpu


def _cnn_branch_kernel(x_ref, w1_ref, b1_ref, w2_ref, b2_ref, wfc_ref, bfc_ref,
                       logits_ref, feat_ref, *, seq_len, t_pad, bb, per_tap):
    # x_ref:   (Bb, T_pad, Cin) f32
    # w1_ref:  (3*Cin, 64)  mxu dtype   b1_ref: (1, 64)  f32
    # w2_ref:  (3*64, 128)  mxu dtype   b2_ref: (1, 128) f32
    # wfc_ref: (128, cpad)  mxu dtype   bfc_ref: (1, cpad) f32
    # logits_ref: (Bb, cpad) f32        feat_ref: (Bb, 128) f32
    f32 = jnp.float32
    T = seq_len
    R = bb * t_pad                      # flattened rows; per-sample time runs on sublanes
    c2 = feat_ref.shape[-1]

    row = lax.broadcasted_iota(jnp.int32, (R, 1), 0)
    tmod = row % t_pad
    not_first = tmod != 0               # per-sample left edge (torch zero pad)
    not_last = tmod != t_pad - 1        # per-sample right edge / cross-sample wrap
    valid = tmod < T                    # real (non time-padding) rows

    def conv1d_k3_relu(h, w_ref, b_ref):
        # h: (R, C) f32.  k=3 "same" conv as roll + boundary mask + one fused MXU matmul.
        h_prev = jnp.where(not_first, pltpu.roll(h, shift=1, axis=0), 0.0)      # h[t-1]
        h_next = jnp.where(not_last, pltpu.roll(h, shift=R - 1, axis=0), 0.0)   # h[t+1]
        md = w_ref.dtype
        # Cast to the MXU dtype before the concat so the 3x-wide taps intermediate is
        # half-width (roll/mask stay f32 to keep the sublane roll layout simple).
        hp, hc, hn = h_prev.astype(md), h.astype(md), h_next.astype(md)
        if per_tap:
            # v7x (MRB) friendly variant: three K=C pushes accumulate in place, no
            # cross-128-lane concatenate.  Keep the fused path on v5e/v6e (MRF).
            w = w_ref[...]
            C = h.shape[1]
            y = (jnp.dot(hp, w[0:C, :], preferred_element_type=f32)
                 + jnp.dot(hc, w[C:2 * C, :], preferred_element_type=f32)
                 + jnp.dot(hn, w[2 * C:3 * C, :], preferred_element_type=f32))
        else:
            taps = jnp.concatenate([hp, hc, hn], axis=1)                        # (R, 3*C)
            y = jnp.dot(taps, w_ref[...], preferred_element_type=f32)
        y = jnp.maximum(y + b_ref[...], 0.0)                                    # bias+ReLU f32
        if t_pad != T:
            # Zero the time-padding rows: reproduces torch's zero right-padding for the
            # next conv and keeps them out of the mean pool.
            y = jnp.where(valid, y, 0.0)
        return y

    x = x_ref[...].reshape(R, x_ref.shape[-1]).astype(f32)   # (R, Cin), padded rows are 0
    h1 = conv1d_k3_relu(x, w1_ref, b1_ref)                   # (R, 64)
    h2 = conv1d_k3_relu(h1, w2_ref, b2_ref)                  # (R, 128)

    # AdaptiveAvgPool1d(1): per-sample mean over the T valid time steps.
    feat = h2.reshape(bb, t_pad, c2).sum(axis=1) * (1.0 / T)  # (Bb, 128) f32
    feat_ref[...] = feat
    logits_ref[...] = (jnp.dot(feat.astype(wfc_ref.dtype), wfc_ref[...],
                               preferred_element_type=f32) + bfc_ref[...])


def cnn_branch_forward(x_btc, torch_params, *, mxu_dtype=jnp.bfloat16,
                       max_block_rows=1024, per_tap_dots=False):
    """x_btc: (B, T, Cin) f32; torch_params in PyTorch layouts.
    Returns (logits (B, num_classes) f32, feat (B, 128) f32)."""
    w1_oiw, b1, w2_oiw, b2, wfc_oi, bfc = torch_params
    B, T, Cin = x_btc.shape
    C1 = w1_oiw.shape[0]                       # 64
    C2 = w2_oiw.shape[0]                       # 128
    num_classes = wfc_oi.shape[0]
    cpad = pl.cdiv(num_classes, 128) * 128     # lane-dense logits slab

    # Pad time to a multiple of 8 (clean sublane roll / (8,128) tiles).
    t_pad = pl.cdiv(T, 8) * 8

    # Batch block: big enough to amortize per-step overhead, multiple of 8 when the
    # grid has more than one step (dense output stores).
    bb = max(1, max_block_rows // t_pad)
    if bb >= B:
        bb = B                                 # single step; block equals full batch dim
    else:
        bb = max(8, (bb // 8) * 8)
    b_pad = pl.cdiv(B, bb) * bb
    grid_steps = b_pad // bb

    # Zero-pad x in batch and time; x stays f32 in HBM (cast happens on taps in-kernel).
    x_p = jnp.zeros((b_pad, t_pad, Cin), jnp.float32).at[:B, :T, :].set(
        x_btc.astype(jnp.float32))

    # Repack weights for the fused 3-tap matmuls: (Cout,Cin,K) -> (K*Cin, Cout).
    w1f = jnp.transpose(w1_oiw, (2, 1, 0)).reshape(3 * Cin, C1).astype(mxu_dtype)
    w2f = jnp.transpose(w2_oiw, (2, 1, 0)).reshape(3 * C1, C2).astype(mxu_dtype)
    wfc_p = jnp.zeros((C2, cpad), jnp.float32).at[:, :num_classes].set(wfc_oi.T).astype(mxu_dtype)
    bfc_p = jnp.zeros((1, cpad), jnp.float32).at[:, :num_classes].set(bfc)
    b1_2 = b1.reshape(1, C1).astype(jnp.float32)
    b2_2 = b2.reshape(1, C2).astype(jnp.float32)

    def resident(arr):
        nd = arr.ndim
        return pl.BlockSpec(arr.shape, lambda g, _n=nd: (0,) * _n)

    kernel = functools.partial(_cnn_branch_kernel, seq_len=T, t_pad=t_pad,
                               bb=bb, per_tap=per_tap_dots)

    logits_p, feat_p = pl.pallas_call(
        kernel,
        out_shape=(jax.ShapeDtypeStruct((b_pad, cpad), jnp.float32),
                   jax.ShapeDtypeStruct((b_pad, C2), jnp.float32)),
        grid=(grid_steps,),
        in_specs=[pl.BlockSpec((bb, t_pad, Cin), lambda g: (g, 0, 0)),
                  resident(w1f), resident(b1_2),
                  resident(w2f), resident(b2_2),
                  resident(wfc_p), resident(bfc_p)],
        out_specs=(pl.BlockSpec((bb, cpad), lambda g: (g, 0)),
                   pl.BlockSpec((bb, C2), lambda g: (g, 0))),
        compiler_params=pltpu.CompilerParams(
            dimension_semantics=("parallel",)),   # batch blocks are independent -> both TCs
    )(x_p, w1f, b1_2, w2f, b2_2, wfc_p, bfc_p)

    # TODO(synk): for very long sequences add a second "arbitrary" grid axis over time
    # tiles (2-row halo on x, (Bb,128) pooling accumulator in VMEM finalized with pl.when).
    return logits_p[:B, :num_classes], feat_p[:B, :]


def reference_forward(x_btc, torch_params):
    """Pure-JAX reference matching the PyTorch module exactly (NCW conv)."""
    w1_oiw, b1, w2_oiw, b2, wfc_oi, bfc = torch_params
    x_ncw = jnp.transpose(x_btc, (0, 2, 1))          # x.permute(0, 2, 1)
    dn = ("NCH", "OIH", "NCH")
    h1 = lax.conv_general_dilated(x_ncw, w1_oiw, (1,), [(1, 1)], dimension_numbers=dn)
    h1 = jnp.maximum(h1 + b1[None, :, None], 0.0)
    h2 = lax.conv_general_dilated(h1, w2_oiw, (1,), [(1, 1)], dimension_numbers=dn)
    h2 = jnp.maximum(h2 + b2[None, :, None], 0.0)
    feat = jnp.mean(h2, axis=-1)                     # AdaptiveAvgPool1d(1).squeeze(-1)
    logits = feat @ wfc_oi.T + bfc
    return logits, feat


def _make_params(key, in_features, num_classes):
    k1, k2, k3, k4, k5, k6 = jax.random.split(key, 6)
    w1_oiw = jax.random.uniform(k1, (64, in_features, 3), jnp.float32, -0.3, 0.3)
    b1 = jax.random.uniform(k2, (64,), jnp.float32, -0.1, 0.1)
    w2_oiw = jax.random.uniform(k3, (128, 64, 3), jnp.float32, -0.08, 0.08)
    b2 = jax.random.uniform(k4, (128,), jnp.float32, -0.1, 0.1)
    wfc_oi = jax.random.uniform(k5, (num_classes, 128), jnp.float32, -0.09, 0.09)
    bfc = jax.random.uniform(k6, (num_classes,), jnp.float32, -0.1, 0.1)
    return (w1_oiw, b1, w2_oiw, b2, wfc_oi, bfc)


if __name__ == "__main__":
    key = jax.random.PRNGKey(0)
    kx1, kx2, kp = jax.random.split(key, 3)

    # --- Config 1: tiny demo shapes (single grid step), f32 + bf16 MXU paths. ---
    B, T, IN_FEATURES, NUM_CLASSES = 2, 8, 4, 5
    params = _make_params(kp, IN_FEATURES, NUM_CLASSES)
    x = jax.random.normal(kx1, (B, T, IN_FEATURES), dtype=jnp.float32)
    ref_logits, ref_feat = reference_forward(x, params)

    logits32, feat32 = jax.block_until_ready(
        cnn_branch_forward(x, params, mxu_dtype=jnp.float32))
    assert logits32.shape == (B, NUM_CLASSES) and feat32.shape == (B, 128)
    assert jnp.allclose(feat32, ref_feat, atol=1e-4, rtol=1e-4)
    assert jnp.allclose(logits32, ref_logits, atol=1e-4, rtol=1e-4)

    logits_bf, feat_bf = jax.block_until_ready(
        cnn_branch_forward(x, params, mxu_dtype=jnp.bfloat16))
    assert logits_bf.shape == (B, NUM_CLASSES) and feat_bf.shape == (B, 128)
    assert jnp.allclose(feat_bf, ref_feat, atol=5e-2, rtol=5e-2)
    assert jnp.allclose(logits_bf, ref_logits, atol=5e-2, rtol=5e-2)

    # --- Config 2: ragged time (T=12 -> pad 16), batch padding, multi-step grid. ---
    B2, T2 = 20, 12
    x2 = jax.random.normal(kx2, (B2, T2, IN_FEATURES), dtype=jnp.float32)
    ref_logits2, ref_feat2 = reference_forward(x2, params)
    logits2, feat2 = jax.block_until_ready(
        cnn_branch_forward(x2, params, mxu_dtype=jnp.float32, max_block_rows=64))
    assert logits2.shape == (B2, NUM_CLASSES) and feat2.shape == (B2, 128)
    assert jnp.allclose(feat2, ref_feat2, atol=1e-4, rtol=1e-4)
    assert jnp.allclose(logits2, ref_logits2, atol=1e-4, rtol=1e-4)

    print("KERNEL_OK")
</pallas_src>

<mosaic_0001>
module attributes {stable_mosaic.version = 11 : i64} {
  func.func @_cnn_branch_kernel(%arg0: i32, %arg1: memref<2x8x4xf32, #tpu.memory_space<vmem>>, %arg2: memref<12x64xf32, #tpu.memory_space<vmem>>, %arg3: memref<1x64xf32, #tpu.memory_space<vmem>>, %arg4: memref<192x128xf32, #tpu.memory_space<vmem>>, %arg5: memref<1x128xf32, #tpu.memory_space<vmem>>, %arg6: memref<128x128xf32, #tpu.memory_space<vmem>>, %arg7: memref<1x128xf32, #tpu.memory_space<vmem>>, %arg8: memref<2x128xf32, #tpu.memory_space<vmem>>, %arg9: memref<2x128xf32, #tpu.memory_space<vmem>>) attributes {dimension_semantics = [#tpu.dimension_semantics<parallel>], iteration_bounds = array<i64: 1>, scalar_prefetch = 0 : i64, scratch_operands = 0 : i64, tpu.core_type = #tpu.core_type<tc>, window_params = [{transform_indices = @transform_0, window_bounds = array<i64: 2, 8, 4>}, {pipeline_mode = #tpu.pipeline_mode<synchronous>, transform_indices = @transform_1, window_bounds = array<i64: 12, 64>}, {pipeline_mode = #tpu.pipeline_mode<synchronous>, transform_indices = @transform_2, window_bounds = array<i64: 1, 64>}, {pipeline_mode = #tpu.pipeline_mode<synchronous>, transform_indices = @transform_3, window_bounds = array<i64: 192, 128>}, {pipeline_mode = #tpu.pipeline_mode<synchronous>, transform_indices = @transform_4, window_bounds = array<i64: 1, 128>}, {pipeline_mode = #tpu.pipeline_mode<synchronous>, transform_indices = @transform_5, window_bounds = array<i64: 128, 128>}, {pipeline_mode = #tpu.pipeline_mode<synchronous>, transform_indices = @transform_6, window_bounds = array<i64: 1, 128>}, {transform_indices = @transform_7, window_bounds = array<i64: 2, 128>}, {transform_indices = @transform_8, window_bounds = array<i64: 2, 128>}]} {
    %0 = tpu.iota {dimensions = array<i32: 0>} : vector<16x1xi32>
    %c8_i32 = arith.constant 8 : i32
    %c0_i32 = arith.constant 0 : i32
    %1 = arith.cmpi eq, %c8_i32, %c0_i32 : i32
    %c1_i32 = arith.constant 1 : i32
    %2 = arith.select %1, %c1_i32, %c8_i32 : i32
    %3 = vector.broadcast %2 : i32 to vector<16x1xi32>
    %4 = arith.remsi %0, %3 : vector<16x1xi32>
    %c0_i32_0 = arith.constant 0 : i32
    %5 = vector.broadcast %c0_i32_0 : i32 to vector<16x1xi32>
    %6 = arith.cmpi ne, %4, %5 : vector<16x1xi32>
    %c0_i32_1 = arith.constant 0 : i32
    %7 = vector.broadcast %c0_i32_1 : i32 to vector<16x1xi32>
    %8 = arith.cmpi slt, %4, %7 : vector<16x1xi32>
    %c0_i32_2 = arith.constant 0 : i32
    %9 = arith.cmpi slt, %2, %c0_i32_2 : i32
    %10 = vector.broadcast %9 : i1 to vector<16x1xi1>
    %11 = vector.broadcast %10 : vector<16x1xi1> to vector<16x1xi1>
    %12 = arith.xori %8, %11 : vector<16x1xi1>
    %13 = arith.andi %12, %6 : vector<16x1xi1>
    %14 = vector.broadcast %2 : i32 to vector<16x1xi32>
    %15 = arith.addi %4, %14 : vector<16x1xi32>
    %16 = arith.select %13, %15, %4 : vector<16x1xi1>, vector<16x1xi32>
    %c0_i32_3 = arith.constant 0 : i32
    %17 = vector.broadcast %c0_i32_3 : i32 to vector<16x1xi32>
    %18 = arith.cmpi ne, %16, %17 : vector<16x1xi32>
    %c7_i32 = arith.constant 7 : i32
    %19 = vector.broadcast %c7_i32 : i32 to vector<16x1xi32>
    %20 = arith.cmpi ne, %16, %19 : vector<16x1xi32>
    %c0 = arith.constant 0 : index
    %c0_4 = arith.constant 0 : index
    %c0_5 = arith.constant 0 : index
    %21 = vector.load %arg1[%c0, %c0_4, %c0_5] : memref<2x8x4xf32, #tpu.memory_space<vmem>>, vector<2x8x4xf32>
    %22 = vector.shape_cast %21 : vector<2x8x4xf32> to vector<16x4xf32>
    %c1_i32_6 = arith.constant 1 : i32
    %23 = tpu.dynamic_rotate %22 by %c1_i32_6 dim 0 : vector<16x4xf32>, i32 -> vector<16x4xf32>
    %cst = arith.constant 0.000000e+00 : f32
    %24 = vector.shape_cast %18 : vector<16x1xi1> to vector<16x1xi1>
    %25 = vector.broadcast %24 : vector<16x1xi1> to vector<16x4xi1>
    %26 = vector.broadcast %cst : f32 to vector<16x4xf32>
    %27 = arith.select %25, %23, %26 : vector<16x4xi1>, vector<16x4xf32>
    %c15_i32 = arith.constant 15 : i32
    %28 = tpu.dynamic_rotate %22 by %c15_i32 dim 0 : vector<16x4xf32>, i32 -> vector<16x4xf32>
    %cst_7 = arith.constant 0.000000e+00 : f32
    %29 = vector.shape_cast %20 : vector<16x1xi1> to vector<16x1xi1>
    %30 = vector.broadcast %29 : vector<16x1xi1> to vector<16x4xi1>
    %31 = vector.broadcast %cst_7 : f32 to vector<16x4xf32>
    %32 = arith.select %30, %28, %31 : vector<16x4xi1>, vector<16x4xf32>
    %33 = tpu.concatenate %27, %22, %32 in 1 : vector<16x4xf32>, vector<16x4xf32>, vector<16x4xf32> -> vector<16x12xf32>
    %c0_8 = arith.constant 0 : index
    %c0_9 = arith.constant 0 : index
    %34 = vector.load %arg2[%c0_8, %c0_9] : memref<12x64xf32, #tpu.memory_space<vmem>>, vector<12x64xf32>
    %cst_10 = arith.constant dense<0.000000e+00> : vector<16x64xf32>
    %35 = tpu.matmul %33, %34, %cst_10 {dimension_numbers = #tpu.dot_dimension_numbers<[1], [0], [0], [1], [0, 0, 1, 1], [], []>} : vector<16x12xf32>, vector<12x64xf32>, vector<16x64xf32> -> vector<16x64xf32>
    %c0_11 = arith.constant 0 : index
    %c0_12 = arith.constant 0 : index
    %36 = vector.load %arg3[%c0_11, %c0_12] : memref<1x64xf32, #tpu.memory_space<vmem>>, vector<1x64xf32>
    %37 = vector.broadcast %36 : vector<1x64xf32> to vector<16x64xf32>
    %38 = arith.addf %35, %37 : vector<16x64xf32>
    %cst_13 = arith.constant 0.000000e+00 : f32
    %39 = vector.broadcast %cst_13 : f32 to vector<16x64xf32>
    %40 = arith.maximumf %38, %39 : vector<16x64xf32>
    %c1_i32_14 = arith.constant 1 : i32
    %41 = tpu.dynamic_rotate %40 by %c1_i32_14 dim 0 : vector<16x64xf32>, i32 -> vector<16x64xf32>
    %cst_15 = arith.constant 0.000000e+00 : f32
    %42 = vector.shape_cast %18 : vector<16x1xi1> to vector<16x1xi1>
    %43 = vector.broadcast %42 : vector<16x1xi1> to vector<16x64xi1>
    %44 = vector.broadcast %cst_15 : f32 to vector<16x64xf32>
    %45 = arith.select %43, %41, %44 : vector<16x64xi1>, vector<16x64xf32>
    %c15_i32_16 = arith.constant 15 : i32
    %46 = tpu.dynamic_rotate %40 by %c15_i32_16 dim 0 : vector<16x64xf32>, i32 -> vector<16x64xf32>
    %cst_17 = arith.constant 0.000000e+00 : f32
    %47 = vector.shape_cast %20 : vector<16x1xi1> to vector<16x1xi1>
    %48 = vector.broadcast %47 : vector<16x1xi1> to vector<16x64xi1>
    %49 = vector.broadcast %cst_17 : f32 to vector<16x64xf32>
    %50 = arith.select %48, %46, %49 : vector<16x64xi1>, vector<16x64xf32>
    %51 = tpu.concatenate %45, %40, %50 in 1 : vector<16x64xf32>, vector<16x64xf32>, vector<16x64xf32> -> vector<16x192xf32>
    %c0_18 = arith.constant 0 : index
    %c0_19 = arith.constant 0 : index
    %52 = vector.load %arg4[%c0_18, %c0_19] : memref<192x128xf32, #tpu.memory_space<vmem>>, vector<192x128xf32>
    %cst_20 = arith.constant dense<0.000000e+00> : vector<16x128xf32>
    %53 = tpu.matmul %51, %52, %cst_20 {dimension_numbers = #tpu.dot_dimension_numbers<[1], [0], [0], [1], [0, 0, 1, 1], [], []>} : vector<16x192xf32>, vector<192x128xf32>, vector<16x128xf32> -> vector<16x128xf32>
    %c0_21 = arith.constant 0 : index
    %c0_22 = arith.constant 0 : index
    %54 = vector.load %arg5[%c0_21, %c0_22] : memref<1x128xf32, #tpu.memory_space<vmem>>, vector<1x128xf32>
    %55 = vector.broadcast %54 : vector<1x128xf32> to vector<16x128xf32>
    %56 = arith.addf %53, %55 : vector<16x128xf32>
    %cst_23 = arith.constant 0.000000e+00 : f32
    %57 = vector.broadcast %cst_23 : f32 to vector<16x128xf32>
    %58 = arith.maximumf %56, %57 : vector<16x128xf32>
    %59 = vector.shape_cast %58 : vector<16x128xf32> to vector<2x8x128xf32>
    %cst_24 = arith.constant dense<0.000000e+00> : vector<2x128xf32>
    %60 = vector.multi_reduction <add>, %59, %cst_24 [1] : vector<2x8x128xf32> to vector<2x128xf32>
    %cst_25 = arith.constant 1.250000e-01 : f32
    %61 = vector.broadcast %cst_25 : f32 to vector<2x128xf32>
    %62 = arith.mulf %60, %61 : vector<2x128xf32>
    %c0_26 = arith.constant 0 : index
    %c0_27 = arith.constant 0 : index
    %63 = vector.load %arg9[%c0_26, %c0_27] : memref<2x128xf32, #tpu.memory_space<vmem>>, vector<2x128xf32>
    tpu.vector_store %arg9[%c0_26, %c0_27], %62 {strides = array<i32>} : memref<2x128xf32, #tpu.memory_space<vmem>>, vector<2x128xf32>,
    %c0_28 = arith.constant 0 : index
    %c0_29 = arith.constant 0 : index
    %64 = vector.load %arg6[%c0_28, %c0_29] : memref<128x128xf32, #tpu.memory_space<vmem>>, vector<128x128xf32>
    %cst_30 = arith.constant dense<0.000000e+00> : vector<2x128xf32>
    %65 = tpu.matmul %62, %64, %cst_30 {dimension_numbers = #tpu.dot_dimension_numbers<[1], [0], [0], [1], [0, 0, 1, 1], [], []>} : vector<2x128xf32>, vector<128x128xf32>, vector<2x128xf32> -> vector<2x128xf32>
    %c0_31 = arith.constant 0 : index
    %c0_32 = arith.constant 0 : index
    %66 = vector.load %arg7[%c0_31, %c0_32] : memref<1x128xf32, #tpu.memory_space<vmem>>, vector<1x128xf32>
    %67 = vector.broadcast %66 : vector<1x128xf32> to vector<2x128xf32>
    %68 = arith.addf %65, %67 : vector<2x128xf32>
    %c0_33 = arith.constant 0 : index
    %c0_34 = arith.constant 0 : index
    %69 = vector.load %arg8[%c0_33, %c0_34] : memref<2x128xf32, #tpu.memory_space<vmem>>, vector<2x128xf32>
    tpu.vector_store %arg8[%c0_33, %c0_34], %68 {strides = array<i32>} : memref<2x128xf32, #tpu.memory_space<vmem>>, vector<2x128xf32>,
    return
  }
  func.func @transform_0(%arg0: i32) -> (i32, i32, i32) {
    %c0_i32 = arith.constant 0 : i32
    %c0_i32_0 = arith.constant 0 : i32
    %c0_i32_1 = arith.constant 0 : i32
    return %arg0, %c0_i32, %c0_i32_0 : i32, i32, i32
  }
  func.func @transform_1(%arg0: i32) -> (i32, i32) {
    %c0_i32 = arith.constant 0 : i32
    %c0_i32_0 = arith.constant 0 : i32
    %c0_i32_1 = arith.constant 0 : i32
    return %c0_i32, %c0_i32_0 : i32, i32
  }
  func.func @transform_2(%arg0: i32) -> (i32, i32) {
    %c0_i32 = arith.constant 0 : i32
    %c0_i32_0 = arith.constant 0 : i32
    %c0_i32_1 = arith.constant 0 : i32
    return %c0_i32, %c0_i32_0 : i32, i32
  }
  func.func @transform_3(%arg0: i32) -> (i32, i32) {
    %c0_i32 = arith.constant 0 : i32
    %c0_i32_0 = arith.constant 0 : i32
    %c0_i32_1 = arith.constant 0 : i32
    return %c0_i32, %c0_i32_0 : i32, i32
  }
  func.func @transform_4(%arg0: i32) -> (i32, i32) {
    %c0_i32 = arith.constant 0 : i32
    %c0_i32_0 = arith.constant 0 : i32
    %c0_i32_1 = arith.constant 0 : i32
    return %c0_i32, %c0_i32_0 : i32, i32
  }
  func.func @transform_5(%arg0: i32) -> (i32, i32) {
    %c0_i32 = arith.constant 0 : i32
    %c0_i32_0 = arith.constant 0 : i32
    %c0_i32_1 = arith.constant 0 : i32
    return %c0_i32, %c0_i32_0 : i32, i32
  }
  func.func @transform_6(%arg0: i32) -> (i32, i32) {
    %c0_i32 = arith.constant 0 : i32
    %c0_i32_0 = arith.constant 0 : i32
    %c0_i32_1 = arith.constant 0 : i32
    return %c0_i32, %c0_i32_0 : i32, i32
  }
  func.func @transform_7(%arg0: i32) -> (i32, i32) {
    %c0_i32 = arith.constant 0 : i32
    %c0_i32_0 = arith.constant 0 : i32
    return %arg0, %c0_i32 : i32, i32
  }
  func.func @transform_8(%arg0: i32) -> (i32, i32) {
    %c0_i32 = arith.constant 0 : i32
    %c0_i32_0 = arith.constant 0 : i32
    return %arg0, %c0_i32 : i32, i32
  }
}

</mosaic_0001>

<bundles_post_ra>
// kernel: tpu_custom_call.1
= control target key start
LH: loop header
LB: loop body
LE: loop exit
PB: predicated region body
PF: predicated region fallthrough
CT: control target
= control target key end

     0   :  { %14 = vsyncpa [#allocation3], 0  ;;  %s963_s0 = inlined_call_operand.vmem [shape: f32[2,8,4], index: 0, kind: input, shape index: {}]   ;;  %s964_s1 = inlined_call_operand.vmem [shape: f32[12,64], index: 1, kind: input, shape index: {}]   ;;  %s965_s2 = inlined_call_operand.vmem [shape: f32[1,64], index: 2, kind: input, shape index: {}]   ;;  %s966_s3 = inlined_call_operand.hbm [shape: f32[192,128], index: 3, kind: input, shape index: {}]   ;;  %s967_s4 = inlined_call_operand.vmem [shape: f32[1,128], index: 4, kind: input, shape index: {}]   ;;  %s968_s5 = inlined_call_operand.hbm [shape: f32[128,128], index: 5, kind: input, shape index: {}]   ;;  %s969_s6 = inlined_call_operand.vmem [shape: f32[1,128], index: 6, kind: input, shape index: {}]   ;;  %s970_s7 = inlined_call_operand.hbm [shape: f32[2,128], index: 7, kind: output, shape index: {0}]   ;;  %s971_s8 = inlined_call_operand.hbm [shape: f32[2,128], index: 8, kind: output, shape index: {1}]  }
   0x1   :  { %15 = vsyncpa [#allocation6], 0 }
   0x2   :  { %16 = vsyncpa [#allocation4], 0 }
   0x3   :  { %17 = vsyncpa [#allocation9], 0  ;;  %s758_s27 = smov [#allocation2]   ;;  %s662_s9 = scalar_lea.hbm %s966_s3, 3072 }
   0x4   :  { %s29_s28 = sshll.u32 %s758_s27, 4  ;;  %p663_p0 = scmp.ne.s32.totalorder %s966_s3, %s662_s9  ;;  %s30_s28 = int_to_ptr.vmem [resolvable:$true] %s29_s28 }
   0x5   :  { %p666_p1 = scmp.lt.u32.totalorder %s662_s9, %s966_s3 }
   0x7   :  { %p668_p2 = pnand %p666_p1, %p663_p0 }
   0x9   :  { %671 = shalt.err (!%p668_p2)
}
   0xa   :  { %s672_s14 = scalar_lea.vmem %s30_s28, 3072  ;;  %p677_p4 = scmp.lt.s32.totalorder %s30_s28, %s30_s28 }
   0xb   :  { %p673_p3 = scmp.ne.s32.totalorder %s30_s28, %s672_s14  ;;  %p678_p5 = scmp.lt.s32.totalorder %s672_s14, %s672_s14 }
   0xd   :  { %p679_p6 = por %p678_p5, %p677_p4 }
   0xf   :  { %p680_p7 = pnand %p679_p6, %p673_p3 }
  0x11   :  { %683 = shalt.err (!%p680_p7)
}
  0x12   :  { %s759_s15 = smov 128   ;;  %s760_s16 = smov 8  }
  0x13   :  { %35 = dma.hbm_to_vmem [thread:$0]  %s966_s3, 3072, %s30_s28, [#allocation3], %s759_s15, %s759_s15, %s760_s16  }
  0x14   :  { %s761_s19 = smov [#allocation5]   ;;  %s684_s23 = scalar_lea.hbm %s968_s5, 2048 }
  0x15   :  { %s43_s20 = sshll.u32 %s761_s19, 4  ;;  %p685_p8 = scmp.ne.s32.totalorder %s968_s5, %s684_s23  ;;  %s44_s20 = int_to_ptr.vmem [resolvable:$true] %s43_s20 }
  0x16   :  { %p688_p9 = scmp.lt.u32.totalorder %s684_s23, %s968_s5 }
  0x18   :  { %p690_p10 = pnand %p688_p9, %p685_p8 }
  0x1a   :  { %693 = shalt.err (!%p690_p10)
}
  0x1b   :  { %s694_s29 = scalar_lea.vmem %s44_s20, 2048  ;;  %p699_p12 = scmp.lt.s32.totalorder %s44_s20, %s44_s20 }
  0x1c   :  { %p695_p11 = scmp.ne.s32.totalorder %s44_s20, %s694_s29  ;;  %p700_p13 = scmp.lt.s32.totalorder %s694_s29, %s694_s29 }
  0x1e   :  { %p701_p0 = por %p700_p13, %p699_p12 }
  0x20   :  { %p702_p1 = pnand %p701_p0, %p695_p11 }
  0x22   :  { %705 = shalt.err (!%p702_p1)
}
  0x23   :  { %49 = dma.hbm_to_vmem [thread:$0]  %s968_s5, 2048, %s44_s20, [#allocation6], %s759_s15, %s759_s15, %s760_s16  }
  0x24   :  { %750 = dma.done.wait [#allocation3], 3072  }
  0x25   :  { %751 = vsyncadd [#allocation3], 4294964224 }
  0x26   :  { %752 = dma.done.wait [#allocation6], 2048  }
  0x27   :  { %753 = vsyncadd [#allocation6], 4294965248  ;;  %v58_v0 = vlaneseq  ;;  %vm151_vm0 = vcmask 1043456   ;;  %v89_v5 = vld [vmem:[%s963_s0] sm:$0xff]  ;;  %v90_v6 = vld [vmem:[%s963_s0 + $0x8] sm:$0xff]  ;;  %s762_s13 = smov 4  }
  0x28   :  { %v135_v7 = vld [vmem:[%s964_s1] sm:$0xff]  ;;  %115 = vrot.lane.b32.xlu0 %v89_v5, %s762_s13  ;;  %v91_v8 = vrot.slane %v89_v5, 7  ;;  %v102_v9 = vrot.slane %v89_v5, 1  ;;  %v103_v11 = vrot.slane %v90_v6, 1  ;;  %v136_v12 = vld [vmem:[%s964_s1 + $0x8] sm:$0xf] }
  0x29   :  { %v841_v1 = vshrl.u32 %v58_v0, 7  ;;  %vm763_vm4 = vmmov 1   ;;  %v92_v13 = vrot.slane %v90_v6, 7  ;;  %v584_v14 = vpack.c.bf16 %v136_v12, %v135_v7  ;;  %v255_v34 = vld [vmem:[#allocation2] sm:$0xff]  ;;  %v256_v35 = vld [vmem:[#allocation2 + $0x8] sm:$0xff]  ;;  %v257_v36 = vld [vmem:[#allocation2 + $0x10] sm:$0xff] }
  0x2a   :  { %vm585_vm5 = vmpackc.low %vm151_vm0, %vm763_vm4  ;;  %vm129_vm8 = vcmask 31744   ;;  %vm132_vm10 = vcmask 64512   ;;  %vm144_vm11 = vcmask 97280   ;;  %v764_v37 = vmov 0.0|0.0   ;;  %v258_v39 = vld [vmem:[#allocation2 + $0x18] sm:$0xff]  ;;  %v259_v41 = vld [vmem:[#allocation2 + $0x20] sm:$0xff] }
  0x2b   :  { %v65_v2 = vand.u32 7, %v841_v1  ;;  %v60_v3 = vadd.s32 8, %v841_v1  ;;  %vm104_vm1 = vcmp.lt.s32.totalorder %v841_v1, 7  ;;  %vm93_vm2 = vcmp.lt.s32.totalorder %v841_v1, 1  ;;  %586 = vmatprep.subr.msk.bf16.mxu0 %vm585_vm5, %v584_v14  ;;  %590 = vmatprep.subr.bf16.mxu1 %v764_v37  ;;  %v260_v42 = vld [vmem:[#allocation2 + $0x28] sm:$0xff]  ;;  %v261_v44 = vld [vmem:[#allocation2 + $0x30] sm:$0xff] }
  0x2c   :  { %v105_v15 = vsel %vm104_vm1, %v102_v9, %v103_v11  ;;  %v106_v17 = vsel %vm104_vm1, %v103_v11, %v102_v9  ;;  %v95_v19 = vsel %vm93_vm2, %v92_v13, %v91_v8  ;;  %v94_v20 = vsel %vm93_vm2, %v91_v8, %v92_v13  ;;  %117 = vrot.lane.b32.xlu0 %v90_v6, %s762_s13  ;;  %v262_v45 = vld [vmem:[#allocation2 + $0x38] sm:$0xff]  ;;  %v263_v47 = vld [vmem:[#allocation2 + $0x40] sm:$0xff]  ;;  %v264_v48 = vld [vmem:[#allocation2 + $0x48] sm:$0xff] }
  0x2d   :  { %v72_v4 = vand.u32 7, %v60_v3  ;;  %vm856_vm3 = vcmp.ne.s32.totalorder %v65_v2, 7  ;;  %589 = vmatpush3.bf16.msk.msra.mxu0 %vm585_vm5, %v584_v14  ;;  %vm882_vm7 = vcmp.ne.s32.totalorder %v65_v2, 0  ;;  %v591_v38 = vpack.c.bf16 %v256_v35, %v255_v34  ;;  %v265_v50 = vld [vmem:[#allocation2 + $0x50] sm:$0xff]  ;;  %v266_v51 = vld [vmem:[#allocation2 + $0x58] sm:$0xff]  ;;  %v267_v53 = vld [vmem:[#allocation2 + $0x60] sm:$0xff] }
  0x2e   :  { %v111_v18 = vsel %vm856_vm3, %v105_v15, 0.0  ;;  %v100_v23 = vsel %vm882_vm7, %v95_v19, 0.0  ;;  %626 = vmatprep.subr.bf16.mxu0 %v764_v37  ;;  %v594_v40 = vpack.c.bf16 %v258_v39, %v257_v36  ;;  %v597_v43 = vpack.c.bf16 %v260_v42, %v259_v41  ;;  %v268_v54 = vld [vmem:[#allocation2 + $0x68] sm:$0xff]  ;;  %v269_v56 = vld [vmem:[#allocation2 + $0x70] sm:$0xff]  ;;  %v270_v57 = vld [vmem:[#allocation2 + $0x78] sm:$0xff] }
  0x2f   :  { %vm866_vm6 = vcmp.ne.s32.totalorder %v72_v4, 7  ;;  %123 = vrot.lane.b32.xlu1 %v111_v18, %s760_s16  ;;  %vm888_vm9 = vcmp.ne.s32.totalorder %v72_v4, 0  ;;  %592 = vmatpush1.bf16.msra.mxu1 %v591_v38  ;;  %v600_v46 = vpack.c.bf16 %v262_v45, %v261_v44  ;;  %v603_v49 = vpack.c.bf16 %v264_v48, %v263_v47  ;;  %v271_v59 = vld [vmem:[#allocation2 + $0x80] sm:$0xff]  ;;  %v272_v60 = vld [vmem:[#allocation2 + $0x88] sm:$0xff]  ;;  %v273_v62 = vld [vmem:[#allocation2 + $0x90] sm:$0xff] }
  0x30   :  { %v112_v21 = vsel %vm866_vm6, %v106_v17, 0.0  ;;  %v101_v27 = vsel %vm888_vm9, %v94_v20, 0.0  ;;  %593 = vmatprep.subr.bf16.mxu1 %v764_v37  ;;  %v606_v52 = vpack.c.bf16 %v266_v51, %v265_v50  ;;  %v609_v55 = vpack.c.bf16 %v268_v54, %v267_v53  ;;  %v274_v63 = vld [vmem:[#allocation2 + $0x98] sm:$0xff]  ;;  %v275_v2 = vld [vmem:[#allocation2 + $0xa0] sm:$0xff]  ;;  %v276_v3 = vld [vmem:[#allocation2 + $0xa8] sm:$0xff] }
  0x31   :  { %v612_v58 = vpack.c.bf16 %v270_v57, %v269_v56  ;;  %v615_v61 = vpack.c.bf16 %v272_v60, %v271_v59  ;;  %v618_v0 = vpack.c.bf16 %v274_v63, %v273_v62  ;;  %v621_v4 = vpack.c.bf16 %v276_v3, %v275_v2  ;;  %v277_v5 = vld [vmem:[#allocation2 + $0xb0] sm:$0xff]  ;;  %v278_v6 = vld [vmem:[#allocation2 + $0xb8] sm:$0xff]  ;;  %v389_v9 = vld [vmem:[#allocation5] sm:$0xff] }
  0x32   :  { %v624_v7 = vpack.c.bf16 %v278_v6, %v277_v5  ;;  %v513_v8 = vld [vmem:[%s965_s2] ss:$0 sm:$0xff]  ;;  %v390_v11 = vld [vmem:[#allocation5 + $0x8] sm:$0xff]  ;;  %v392_v14 = vld [vmem:[#allocation5 + $0x18] sm:$0xff]  ;;  %vm252_vm12 = vcmask 523264   ;;  %vm766_vm13 = vmmov 0  }
  0x33   :  { %125 = vrot.lane.b32.xlu1 %v112_v21, %s760_s16  ;;  %595 = vmatpush1.bf16.msra.mxu1 %v594_v40  ;;  %v391_v12 = vld [vmem:[#allocation5 + $0x10] sm:$0xff]  ;;  %v627_v13 = vpack.c.bf16 %v390_v11, %v389_v9  ;;  %s765_s16 = smov 64   ;;  %v393_v41 = vld [vmem:[#allocation5 + $0x20] sm:$0xff]  ;;  %v394_v10 = vld [vmem:[#allocation5 + $0x28] sm:$0xff]  ;;  %vm385_vm14 = vcmask 1041409  }
  0x34   :  { %596 = vmatprep.subr.bf16.mxu1 %v764_v37  ;;  %v630_v19 = vpack.c.bf16 %v392_v14, %v391_v12  ;;  %v633_v42 = vpack.c.bf16 %v394_v10, %v393_v41  ;;  %v395_v22 = vld [vmem:[#allocation5 + $0x30] sm:$0xff]  ;;  %v397_v16 = vld [vmem:[#allocation5 + $0x40] sm:$0xff]  ;;  %v398_v45 = vld [vmem:[#allocation5 + $0x48] sm:$0xff] }
  0x35   :  { %v399_v25 = vld [vmem:[#allocation5 + $0x50] sm:$0xff]  ;;  %v400_v47 = vld [vmem:[#allocation5 + $0x58] sm:$0xff]  ;;  %v402_v50 = vld [vmem:[#allocation5 + $0x68] sm:$0xff] }
  0x36   :  { %v642_v48 = vpack.c.bf16 %v400_v47, %v399_v25  ;;  %v404_v53 = vld [vmem:[#allocation5 + $0x78] sm:$0xff]  ;;  %v517_v56 = vld [vmem:[%s967_s4] ss:$0 sm:$0xff]  ;;  %s768_s4 = smov [#allocation8]  }
  0x37   :  { %598 = vmatpush1.bf16.msra.mxu1 %v597_v43  ;;  %v396_v43 = vld [vmem:[#allocation5 + $0x38] sm:$0xff]  ;;  %s499_s18 = sshll.u32 %s768_s4, 4  ;;  %s500_s18 = int_to_ptr.vmem [resolvable:$true] %s499_s18 }
  0x38   :  { %599 = vmatprep.subr.bf16.mxu1 %v764_v37  ;;  %v636_v44 = vpack.c.bf16 %v396_v43, %v395_v22  ;;  %s706_s19 = scalar_lea.vmem %s500_s18, 32  ;;  %p711_p3 = scmp.lt.s32.totalorder %s500_s18, %s500_s18 }
  0x39   :  { %p707_p2 = scmp.ne.s32.totalorder %s500_s18, %s706_s19  ;;  %p712_p4 = scmp.lt.s32.totalorder %s706_s19, %s706_s19 }
  0x3b   :  { %601 = vmatpush1.bf16.msra.mxu1 %v600_v46  ;;  %v639_v46 = vpack.c.bf16 %v398_v45, %v397_v16  ;;  %p713_p5 = por %p712_p4, %p711_p3 }
  0x3c   :  { %602 = vmatprep.subr.bf16.mxu1 %v764_v37 }
  0x3d   :  { %p714_p6 = pnand %p713_p5, %p707_p2 }
  0x3f   :  { %604 = vmatpush1.bf16.msra.mxu1 %v603_v49  ;;  %v401_v49 = vld [vmem:[#allocation5 + $0x60] sm:$0xff] }
  0x40   :  { %605 = vmatprep.subr.bf16.mxu1 %v764_v37  ;;  %v645_v51 = vpack.c.bf16 %v402_v50, %v401_v49 }
  0x43   :  { %607 = vmatpush1.bf16.msra.mxu1 %v606_v52  ;;  %v403_v52 = vld [vmem:[#allocation5 + $0x70] sm:$0xff] }
  0x44   :  { %608 = vmatprep.subr.bf16.mxu1 %v764_v37  ;;  %v648_v54 = vpack.c.bf16 %v404_v53, %v403_v52 }
  0x47   :  { %610 = vmatpush1.bf16.msra.mxu1 %v609_v55  ;;  %v767_v55 = vmov 0.0  }
  0x48   :  { %611 = vmatprep.subr.bf16.mxu1 %v764_v37 }
  0x4b   :  { %613 = vmatpush1.bf16.msra.mxu1 %v612_v58 }
  0x4c   :  { %614 = vmatprep.subr.bf16.mxu1 %v764_v37 }
  0x4f   :  { %616 = vmatpush1.bf16.msra.mxu1 %v615_v61 }
  0x50   :  { %617 = vmatprep.subr.bf16.mxu1 %v764_v37 }
  0x53   :  { %619 = vmatpush1.bf16.msra.mxu1 %v618_v0 }
  0x54   :  { %620 = vmatprep.subr.bf16.mxu1 %v764_v37 }
  0x57   :  { %622 = vmatpush1.bf16.msra.mxu1 %v621_v4 }
  0x58   :  { %623 = vmatprep.subr.bf16.mxu1 %v764_v37 }
  0x5b   :  { %625 = vmatpush1.bf16.msra.mxu1 %v624_v7 }
  0x9a   :  { %v116_v24 = vpop.permute.xlu0 %115 }
  0x9b   :  { %v130_v26 = vsel %vm129_vm8, %v100_v23, %v116_v24 }
  0x9e   :  { %v118_v29 = vpop.permute.xlu0 %117 }
  0x9f   :  { %v131_v31 = vsel %vm129_vm8, %v101_v27, %v118_v29 }
  0xa1   :  { %v124_v28 = vpop.permute.xlu1 %123 }
  0xa2   :  { %v133_v30 = vsel %vm132_vm10, %v130_v26, %v124_v28 }
  0xa3   :  { %546 = vmatprep.mubr.msk.f32.mxu0 %vm144_vm11, %v133_v30 }
  0xa5   :  { %v126_v32 = vpop.permute.xlu1 %125 }
  0xa6   :  { %v134_v33 = vsel %vm132_vm10, %v131_v31, %v126_v32 }
  0xa7   :  { %547 = vmatmul.mubr.msk.f32.vlgmr.msra.gmra.mrb[0].mxu0 %vm144_vm11, %v134_v33 }
  0xa8   :  { %628 = vmatpush3.bf16.msra.mxu0 %v627_v13  ;;  %581 = vmatprep.mubr.msk.f32.mxu0 %vm766_vm13, %v767_v55 }
  0xa9   :  { %629 = vmatprep.subr.bf16.mxu0 %v764_v37 }
  0xac   :  { %631 = vmatpush3.bf16.msra.mxu0 %v630_v19 }
  0xad   :  { %632 = vmatprep.subr.bf16.mxu0 %v764_v37 }
  0xb0   :  { %634 = vmatpush3.bf16.msra.mxu0 %v633_v42 }
  0xb1   :  { %635 = vmatprep.subr.bf16.mxu0 %v764_v37 }
  0xb4   :  { %637 = vmatpush3.bf16.msra.mxu0 %v636_v44 }
  0xb5   :  { %638 = vmatprep.subr.bf16.mxu0 %v764_v37 }
  0xb8   :  { %640 = vmatpush3.bf16.msra.mxu0 %v639_v46 }
  0xb9   :  { %641 = vmatprep.subr.bf16.mxu0 %v764_v37 }
  0xbc   :  { %643 = vmatpush3.bf16.msra.mxu0 %v642_v48 }
  0xbd   :  { %644 = vmatprep.subr.bf16.mxu0 %v764_v37 }
  0xc0   :  { %646 = vmatpush3.bf16.msra.mxu0 %v645_v51 }
  0xc1   :  { %647 = vmatprep.subr.bf16.mxu0 %v764_v37 }
  0xc4   :  { %649 = vmatpush3.bf16.msra.mxu0 %v648_v54 }
 0x17a   :  { %v548_v15 = vpop.f32.mrb[0].mxu0 }
 0x17b   :  { %v227_v17 = vadd.f32 %v548_v15, %v513_v8  ;;  %v221_v18 = vpop.f32.mrb[1].mxu0 }
 0x17c   :  { %v222_v20 = vadd.f32 %v513_v8, %v221_v18 }
 0x17d   :  { %v231_v21 = vmax.f32 %v227_v17, 0.0 }
 0x17e   :  { %v230_v23 = vmax.f32 %v222_v20, 0.0 }
 0x17f   :  { %v233_v24 = vrot.slane %v231_v21, 7  ;;  %v239_v26 = vrot.slane %v231_v21, 1  ;;  %248 = vrot.lane.b32.xlu1 %v231_v21, %s765_s16 }
 0x180   :  { %v232_v27 = vrot.slane %v230_v23, 7  ;;  %v238_v28 = vrot.slane %v230_v23, 1  ;;  %246 = vrot.lane.b32.xlu0 %v230_v23, %s765_s16 }
 0x182   :  { %v240_v29 = vsel %vm104_vm1, %v238_v28, %v239_v26  ;;  %v235_v30 = vsel %vm93_vm2, %v233_v24, %v232_v27  ;;  %v241_v31 = vsel %vm104_vm1, %v239_v26, %v238_v28  ;;  %v234_v32 = vsel %vm93_vm2, %v232_v27, %v233_v24 }
 0x183   :  { %v242_v33 = vsel %vm856_vm3, %v240_v29, 0.0  ;;  %v236_v35 = vsel %vm882_vm7, %v235_v30, 0.0  ;;  %v243_v39 = vsel %vm866_vm6, %v241_v31, 0.0  ;;  %v237_v40 = vsel %vm888_vm9, %v234_v32, 0.0 }
 0x184   :  { %518 = vmatprep.mubr.msk.f32.mxu1 %vm252_vm12, %v242_v33 }
 0x1f1   :  { %v249_v38 = vpop.permute.xlu1 %248 }
 0x1f2   :  { %v247_v34 = vpop.permute.xlu0 %246  ;;  %v254_v1 = vsel %vm252_vm12, %v237_v40, %v249_v38 }
 0x1f3   :  { %v253_v36 = vsel %vm252_vm12, %v236_v35, %v247_v34 }
 0x1f4   :  { %357 = vmatmul.mubr.f32.vlgmr.msra.gmra.mrb[0].mxu1 %v253_v36 }
 0x1f5   :  { %519 = vmatprep.mubr.msk.f32.mxu1 %vm252_vm12, %v243_v39 }
 0x1f8   :  { %362 = vmatmul.mubr.f32.gmra.mrb[2].mxu1 %v254_v1 }
 0x2c7   :  { %v358_v57 = vpop.f32.mrb[0].mxu1 }
 0x2c8   :  { %v359_v58 = vadd.f32 %v517_v56, %v358_v57  ;;  %v360_v59 = vpop.f32.mrb[1].mxu1 }
 0x2ca   :  { %v367_v60 = vmax.f32 %v359_v58, 0.0 }
 0x2cb   :  { %v363_v61 = vpop.f32.mrb[2].mxu1 }
 0x2cc   :  { %v369_v62 = vrot.slane %v367_v60, 4  ;;  %v364_v63 = vadd.f32 %v517_v56, %v363_v61  ;;  %v365_v0 = vpop.f32.mrb[3].mxu1 }
 0x2ce   :  { %v370_v37 = vadd.f32 %v369_v62, %v367_v60  ;;  %v368_v2 = vmax.f32 %v364_v63, 0.0 }
 0x2d0   :  { %v371_v3 = vrot.slane %v370_v37, 2  ;;  %v375_v4 = vrot.slane %v368_v2, 4 }
 0x2d2   :  { %v372_v5 = vadd.f32 %v371_v3, %v370_v37  ;;  %v376_v6 = vadd.f32 %v375_v4, %v368_v2 }
 0x2d4   :  { %v373_v7 = vrot.slane %v372_v5, 1  ;;  %v377_v8 = vrot.slane %v376_v6, 2 }
 0x2d6   :  { %v378_v9 = vadd.f32 %v377_v8, %v376_v6  ;;  %v374_v11 = vadd.f32 %v373_v7, %v372_v5 }
 0x2d8   :  { %v379_v12 = vrot.slane %v378_v9, 1  ;;  %v381_v14 = vmul.f32 0.125, %v374_v11 }
 0x2da   :  { %v380_v13 = vadd.f32 %v379_v12, %v378_v9 }
 0x2dc   :  { %v382_v15 = vmul.f32 0.125, %v380_v13 }
 0x2de   :  { %v386_v17 = vsel %vm385_vm14, %v382_v15, %v381_v14 }
 0x2df   :  { %582 = vmatmul.mubr.f32.vlgmr.msra.gmra.mrb[2].mxu0 %v386_v17  ;;  %388 = vst [vmem:[#allocation8] sm:$0x3] %v386_v17 }
 0x2e0   :  { %717 = shalt.err (!%p714_p6)
}
 0x2e1   :  { %s718_s22 = scalar_lea.hbm %s971_s8, 32 }
 0x2e2   :  { %p719_p7 = scmp.ne.s32.totalorder %s971_s8, %s718_s22  ;;  %p722_p8 = scmp.lt.u32.totalorder %s718_s22, %s971_s8 }
 0x2e4   :  { %p724_p9 = pnand %p722_p8, %p719_p7 }
 0x2e6   :  { %727 = shalt.err (!%p724_p9)
}
 0x2e7   :  { %502 = dma.vmem_to_hbm [thread:$0]  %s500_s18, 32, %s971_s8, [#allocation9]   ;;  %v520_v18 = vld [vmem:[%s969_s6] ss:$0 sm:$0xff] }
 0x2e8   :  { %s769_s30 = smov [#allocation7]  }
 0x2e9   :  { %s489_s9 = sshll.u32 %s769_s30, 4  ;;  %s490_s9 = int_to_ptr.vmem [resolvable:$true] %s489_s9 }
 0x2ea   :  { %s728_s10 = scalar_lea.vmem %s490_s9, 32  ;;  %p733_p11 = scmp.lt.s32.totalorder %s490_s9, %s490_s9 }
 0x2eb   :  { %p729_p10 = scmp.ne.s32.totalorder %s490_s9, %s728_s10  ;;  %p734_p12 = scmp.lt.s32.totalorder %s728_s10, %s728_s10 }
 0x2ed   :  { %p735_p13 = por %p734_p12, %p733_p11 }
 0x2ef   :  { %p736_p0 = pnand %p735_p13, %p729_p10 }
 0x3b2   :  { %v478_v19 = vpop.f32.mrb[2].mxu0 }
 0x3b3   :  { %v479_v20 = vadd.f32 %v520_v18, %v478_v19  ;;  %v583_v21 = vpop.f32.mrb[3].mxu0 }
 0x3b5   :  { %482 = vst [vmem:[#allocation7] sm:$0x3] %v479_v20 }
 0x3b6   :  { %739 = shalt.err (!%p736_p0)
}
 0x3b7   :  { %s740_s5 = scalar_lea.hbm %s970_s7, 32 }
 0x3b8   :  { %p741_p1 = scmp.ne.s32.totalorder %s970_s7, %s740_s5  ;;  %p744_p2 = scmp.lt.u32.totalorder %s740_s5, %s970_s7 }
 0x3ba   :  { %p746_p3 = pnand %p744_p2, %p741_p1 }
 0x3bc   :  { %749 = shalt.err (!%p746_p3)
}
 0x3bd   :  { %492 = dma.vmem_to_hbm [thread:$0]  %s490_s9, 32, %s970_s7, [#allocation4]  }
 0x3be   :  { %754 = dma.done.wait [#allocation4], 32  }
 0x3bf   :  { %755 = vsyncadd [#allocation4], 4294967264 }
 0x3c0   :  { %756 = dma.done.wait [#allocation9], 32  }
 0x3c1   :  { %757 = vsyncadd [#allocation9], 4294967264 }
 0x3c2   :  { %509 = vsyncpa [#allocation3], 1 }
 0x3c3   :  { %510 = vsyncpa [#allocation6], 1 }
 0x3c4   :  { %511 = vsyncpa [#allocation4], 1 }
 0x3c5   :  { %512 = vsyncpa [#allocation9], 1 }

</bundles_post_ra>
